<compile_context>
chip_gen: v7x
topology: tpu7x:2x2x1
jax: 0.10.0
libtpu: 0.0.40
codegen_flags: <defaults>
</compile_context>

<pallas_src>
import math

import numpy as np
import jax
import jax.numpy as jnp
from jax.experimental import pallas as pl
from jax.experimental.pallas import tpu as pltpu


# ---------------------------------------------------------------------------
# Kernels
# ---------------------------------------------------------------------------

def _mlp_kernel_fused(x_ref, w1_ref, b1_ref, w2_ref, b2_ref, o_ref):
    """Single reduction block (TE == EP): whole MLP in one shot, no scratch."""
    h = jnp.dot(x_ref[...], w1_ref[...], preferred_element_type=jnp.float32)
    h = jnp.maximum(h + b1_ref[...], 0.0)
    y = jnp.dot(h.astype(w2_ref.dtype), w2_ref[...],
                preferred_element_type=jnp.float32)
    o_ref[...] = (y + b2_ref[...]).astype(o_ref.dtype)


def _mlp_kernel_acc_out(x_ref, w1_ref, b1_ref, w2_ref, b2_ref, o_ref):
    """Embedding-blocked reduction, f32 output: accumulate directly into o_ref."""
    e = pl.program_id(1)

    @pl.when(e == 0)
    def _():
        o_ref[...] = jnp.zeros_like(o_ref)

    h = jnp.dot(x_ref[...], w1_ref[...], preferred_element_type=jnp.float32)
    h = jnp.maximum(h + b1_ref[...], 0.0)
    o_ref[...] += jnp.dot(h.astype(w2_ref.dtype), w2_ref[...],
                          preferred_element_type=jnp.float32)

    @pl.when(e == pl.num_programs(1) - 1)
    def _():
        o_ref[...] += b2_ref[...]


def _mlp_kernel_acc_scratch(x_ref, w1_ref, b1_ref, w2_ref, b2_ref, o_ref,
                            acc_ref):
    """Embedding-blocked reduction, narrow output: f32 VMEM accumulator."""
    e = pl.program_id(1)

    @pl.when(e == 0)
    def _():
        acc_ref[...] = jnp.zeros_like(acc_ref)

    h = jnp.dot(x_ref[...], w1_ref[...], preferred_element_type=jnp.float32)
    h = jnp.maximum(h + b1_ref[...], 0.0)
    acc_ref[...] += jnp.dot(h.astype(w2_ref.dtype), w2_ref[...],
                            preferred_element_type=jnp.float32)

    @pl.when(e == pl.num_programs(1) - 1)
    def _():
        o_ref[...] = (acc_ref[...] + b2_ref[...]).astype(o_ref.dtype)


# ---------------------------------------------------------------------------
# Sizing helpers
# ---------------------------------------------------------------------------

def _round_up(x, m):
    return ((x + m - 1) // m) * m


def _cdiv(a, b):
    return (a + b - 1) // b


def _pad_lane(d):
    """Pad a feature dim to a multiple of 128; prefer 256 (full v6e/v7x MXU
    fill) when the extra zero padding is small."""
    p128 = _round_up(d, 128)
    p256 = _round_up(d, 256)
    return p256 if (p256 - d) <= (d // 16) else p128


def _pad2d(a, rows, cols):
    pr, pc = rows - a.shape[0], cols - a.shape[1]
    if pr == 0 and pc == 0:
        return a
    return jnp.pad(a, ((0, pr), (0, pc)))


def _vmem_budgets():
    """(tile_footprint_budget, scoped_vmem_limit) — generation aware."""
    phys = 64 * 1024 * 1024  # conservative default (v7x-class)
    try:
        info = pltpu.get_tpu_info()
        cap = getattr(info, "vmem_capacity_bytes", None)
        if cap:
            phys = int(cap)
    except Exception:
        pass
    if phys >= 100 * 1024 * 1024:          # v5e / v6e: 128 MiB VMEM
        return 72 * 1024 * 1024, 100 * 1024 * 1024
    return 38 * 1024 * 1024, 48 * 1024 * 1024   # v7x-class: 64 MiB VMEM


def _footprint_bytes(tm, te, hp, yp, op_bytes, out_bytes):
    """VMEM bytes for one grid step (double-buffered pipelined operands plus
    in-kernel temporaries and compiler-scratch slack)."""
    x_b = 2 * tm * hp * op_bytes
    w1_b = 2 * hp * te * op_bytes
    b1_b = 2 * te * 4
    w2_b = 2 * te * yp * op_bytes
    b2_b = 2 * yp * 4
    out_b = 2 * tm * yp * out_bytes
    hid_b = tm * te * 4                     # f32 hidden activation
    cast_b = tm * te * op_bytes             # op-dtype copy feeding 2nd matmul
    acc_b = tm * yp * 4                     # f32 accumulator (conservative)
    slack = 2 * 1024 * 1024                 # compiler internal scratch
    return (x_b + w1_b + b1_b + w2_b + b2_b + out_b
            + hid_b + cast_b + acc_b + slack)


def _tm_candidates(m, op_bytes):
    """(tm, padded_m, n_tiles, waste) candidates.  Sub-128 only for tiny M;
    bf16 operands need sublane-pair alignment (16)."""
    sub = 16 if op_bytes < 4 else 8
    m_eff = max(m, sub)
    mp_min = _round_up(m_eff, sub)
    if mp_min <= 128:
        return [(mp_min, mp_min, 1, 1.0)]
    cands = []
    for t in (2048, 1536, 1024, 768, 512, 256, 128):
        if t > mp_min:
            continue
        mp_c = _round_up(m_eff, t)
        cands.append((t, mp_c, mp_c // t, mp_c / m_eff))
    if not cands:
        cands = [(mp_min, mp_min, 1, 1.0)]
    return cands


def _choose_tiles(m, hp, ep, yp, op_bytes, out_bytes, budget):
    """Returns (tm, mp, te, ep_padded, n_e_blocks)."""
    cands = _tm_candidates(m, op_bytes)

    def fp(tm, te):
        return _footprint_bytes(tm, te, hp, yp, op_bytes, out_bytes)

    # Phase 1: fully VMEM-resident weights (TE == EP, single reduction block).
    # Prefer: low padding waste, >= 2 M tiles (v7x megacore), then largest TM.
    phase1 = sorted(cands, key=lambda c: (c[3] > 1.3, c[2] < 2, -c[0]))
    for tm, mp_c, _, _ in phase1:
        if fp(tm, ep) <= budget:
            return tm, mp_c, ep, ep, 1

    # Phase 2: block the embedding axis.  Weights are re-streamed once per M
    # tile, so maximize TM first, then grow TE as far as the budget allows,
    # choosing TE to (approximately) divide EP to avoid zero-tile waste.
    te_floor = min(ep, 512)
    phase2 = sorted(cands, key=lambda c: (c[3] > 1.3, -c[0]))
    for tm, mp_c, _, _ in phase2:
        if fp(tm, te_floor) > budget:
            continue
        b_per_te = (2 * hp * op_bytes + 8 + 2 * yp * op_bytes
                    + tm * 4 + tm * op_bytes)
        te_cap = (budget - fp(tm, 0)) // max(b_per_te, 1)
        te_cap = max(te_floor, (te_cap // 128) * 128)
        te_cap = min(te_cap, ep)
        n_e = _cdiv(ep, te_cap)
        te = _round_up(_cdiv(ep, n_e), 128)
        return tm, mp_c, te, n_e * te, n_e

    # Fallback: smallest TM, modest TE (pathologically large hp/yp only).
    tm, mp_c, _, _ = min(cands, key=lambda c: c[0])
    n_e = _cdiv(ep, te_floor)
    te = _round_up(_cdiv(ep, n_e), 128)
    return tm, mp_c, te, n_e * te, n_e


# ---------------------------------------------------------------------------
# Forward
# ---------------------------------------------------------------------------

def mlp_plain_forward(h, w1, b1, w2, b2, *, mxu_dtype=jnp.bfloat16,
                      interpret=False):
    """h: [..., h_size]; returns [..., y_size].

    mxu_dtype: dtype of the MXU operands (default bfloat16: native MXU
    throughput on v5e/v6e/v7x, f32 accumulation and f32 bias/ReLU epilogue).
    Pass jnp.float32 (or None to match the input dtype) for the
    close-to-PyTorch-fp32 parity path.
    """
    orig_shape = h.shape
    h_size = orig_shape[-1]
    emb = w1.shape[1]
    y_size = w2.shape[1]
    out_dtype = h.dtype
    out_np = np.dtype(out_dtype)

    x2d = h.reshape(-1, h_size)
    m = x2d.shape[0]

    op_dtype = np.dtype(mxu_dtype) if mxu_dtype is not None else np.dtype(h.dtype)
    op_bytes = op_dtype.itemsize

    x2d = x2d.astype(op_dtype)
    w1 = jnp.asarray(w1).astype(op_dtype)
    w2 = jnp.asarray(w2).astype(op_dtype)
    b1 = jnp.asarray(b1, jnp.float32).reshape(1, emb)   # bias math stays f32
    b2 = jnp.asarray(b2, jnp.float32).reshape(1, y_size)

    # Lane-dense padding of the feature dims (128, or 256 when cheap).
    hp = _pad_lane(h_size)
    ep = _pad_lane(emb)
    yp = _pad_lane(y_size)

    budget, vmem_limit = _vmem_budgets()
    tm, mp, te, ep_p, ne = _choose_tiles(m, hp, ep, yp, op_bytes,
                                         out_np.itemsize, budget)

    x_p = _pad2d(x2d, mp, hp)
    w1_p = _pad2d(w1, hp, ep_p)
    b1_p = _pad2d(b1, 1, ep_p)
    w2_p = _pad2d(w2, ep_p, yp)
    b2_p = _pad2d(b2, 1, yp)

    m_tiles = mp // tm

    # Honest HBM-traffic estimate: weights are re-read once per M tile only
    # when the embedding axis is blocked (ne > 1).
    weight_bytes = (hp * ep_p + ep_p * yp) * op_bytes
    weight_traffic = weight_bytes * (m_tiles if ne > 1 else 1)
    cost = pl.CostEstimate(
        flops=2 * mp * (hp * ep_p + ep_p * yp),
        transcendentals=0,
        bytes_accessed=int(x_p.size * op_bytes + weight_traffic
                           + b1_p.size * 4 + b2_p.size * 4
                           + mp * yp * out_np.itemsize))

    if ne == 1:
        # Weights / biases grid-invariant -> DMA'd once, VMEM-resident across
        # all M tiles; x / out double-buffered over the parallel M axis.
        out = pl.pallas_call(
            _mlp_kernel_fused,
            out_shape=jax.ShapeDtypeStruct((mp, yp), out_dtype),
            grid=(m_tiles,),
            in_specs=[
                pl.BlockSpec((tm, hp), lambda i: (i, 0)),     # x
                pl.BlockSpec((hp, ep_p), lambda i: (0, 0)),   # w1 (resident)
                pl.BlockSpec((1, ep_p), lambda i: (0, 0)),    # b1 (resident)
                pl.BlockSpec((ep_p, yp), lambda i: (0, 0)),   # w2 (resident)
                pl.BlockSpec((1, yp), lambda i: (0, 0)),      # b2 (resident)
            ],
            out_specs=pl.BlockSpec((tm, yp), lambda i: (i, 0)),
            compiler_params=pltpu.CompilerParams(
                dimension_semantics=("parallel",),
                vmem_limit_bytes=vmem_limit),
            cost_estimate=cost,
            interpret=interpret,
        )(x_p, w1_p, b1_p, w2_p, b2_p)
    else:
        common = dict(
            out_shape=jax.ShapeDtypeStruct((mp, yp), out_dtype),
            grid=(m_tiles, ne),
            in_specs=[
                pl.BlockSpec((tm, hp), lambda i, e: (i, 0)),   # x
                pl.BlockSpec((hp, te), lambda i, e: (0, e)),   # w1 (e-blocked)
                pl.BlockSpec((1, te), lambda i, e: (0, e)),    # b1
                pl.BlockSpec((te, yp), lambda i, e: (e, 0)),   # w2 (e-blocked)
                pl.BlockSpec((1, yp), lambda i, e: (0, 0)),    # b2 (resident)
            ],
            out_specs=pl.BlockSpec((tm, yp), lambda i, e: (i, 0)),
            compiler_params=pltpu.CompilerParams(
                dimension_semantics=("parallel", "arbitrary"),
                vmem_limit_bytes=vmem_limit),
            cost_estimate=cost,
            interpret=interpret,
        )
        if out_np == np.dtype(np.float32):
            # f32 output: accumulate directly into the (revisited) output
            # block -> saves the tm*yp*4 B scratch and the final copy.
            out = pl.pallas_call(_mlp_kernel_acc_out, **common)(
                x_p, w1_p, b1_p, w2_p, b2_p)
        else:
            out = pl.pallas_call(
                _mlp_kernel_acc_scratch,
                scratch_shapes=[pltpu.VMEM((tm, yp), jnp.float32)],
                **common)(x_p, w1_p, b1_p, w2_p, b2_p)

    out = out[:m, :y_size]
    return out.reshape(*orig_shape[:-1], y_size)


# ---------------------------------------------------------------------------
# Parameter init (mirrors the PyTorch module)
# ---------------------------------------------------------------------------

def init_mlp_plain_params(key, h_size, embedding_size, y_size,
                          dtype=jnp.float32):
    """xavier_uniform(gain=calculate_gain('relu')) weights; default-ish bias."""
    k1, k2, k3, k4 = jax.random.split(key, 4)
    gain = math.sqrt(2.0)  # calculate_gain('relu')

    def xavier_uniform(k, fan_in, fan_out):
        bound = gain * math.sqrt(6.0 / (fan_in + fan_out))
        # stored as [in, out] so the kernel does x @ W
        return jax.random.uniform(k, (fan_in, fan_out), dtype=dtype,
                                  minval=-bound, maxval=bound)

    def bias_init(k, fan_in, fan_out):
        bound = 1.0 / math.sqrt(fan_in)
        return jax.random.uniform(k, (1, fan_out), dtype=dtype,
                                  minval=-bound, maxval=bound)

    w1 = xavier_uniform(k1, h_size, embedding_size)
    b1 = bias_init(k2, h_size, embedding_size)
    w2 = xavier_uniform(k3, embedding_size, y_size)
    b2 = bias_init(k4, embedding_size, y_size)
    return w1, b1, w2, b2


if __name__ == "__main__":
    # Small shapes consistent with the module's forward: h is [batch, seq, h_size].
    batch, seq = 2, 8
    h_size, embedding_size, y_size = 32, 64, 16

    key = jax.random.PRNGKey(0)
    k_in, k_params = jax.random.split(key)
    h = jax.random.normal(k_in, (batch, seq, h_size), dtype=jnp.float32)
    w1, b1, w2, b2 = init_mlp_plain_params(k_params, h_size, embedding_size, y_size)

    x2d = h.reshape(-1, h_size)
    hi = jax.lax.Precision.HIGHEST

    # f32 MXU-operand path vs. full-precision JAX reference.
    ref_f32 = jnp.maximum(jnp.dot(x2d, w1, precision=hi) + b1, 0.0)
    ref_f32 = (jnp.dot(ref_f32, w2, precision=hi) + b2).reshape(batch, seq, y_size)
    y_f32 = jax.block_until_ready(
        mlp_plain_forward(h, w1, b1, w2, b2, mxu_dtype=jnp.float32))
    assert y_f32.shape == (batch, seq, y_size)
    assert jnp.allclose(y_f32, ref_f32, atol=1e-4, rtol=1e-4)

    # Default (bf16 MXU operands, f32 accumulate/epilogue) vs. matching ref.
    ref_bf = jnp.maximum(
        jnp.dot(x2d.astype(jnp.bfloat16), w1.astype(jnp.bfloat16),
                preferred_element_type=jnp.float32) + b1, 0.0)
    ref_bf = (jnp.dot(ref_bf.astype(jnp.bfloat16), w2.astype(jnp.bfloat16),
                      preferred_element_type=jnp.float32) + b2
              ).reshape(batch, seq, y_size)
    y_bf16 = jax.block_until_ready(mlp_plain_forward(h, w1, b1, w2, b2))
    assert y_bf16.shape == (batch, seq, y_size)
    assert jnp.allclose(y_bf16, ref_bf, atol=1e-2, rtol=1e-2)

    print("KERNEL_OK")
</pallas_src>

<mosaic_0001>
module attributes {stable_mosaic.version = 11 : i64} {
  func.func @_mlp_kernel_fused(%arg0: i32, %arg1: memref<16x128xf32, #tpu.memory_space<vmem>>, %arg2: memref<128x128xf32, #tpu.memory_space<vmem>>, %arg3: memref<1x128xf32, #tpu.memory_space<vmem>>, %arg4: memref<128x128xf32, #tpu.memory_space<vmem>>, %arg5: memref<1x128xf32, #tpu.memory_space<vmem>>, %arg6: memref<16x128xf32, #tpu.memory_space<vmem>>) attributes {dimension_semantics = [#tpu.dimension_semantics<parallel>], iteration_bounds = array<i64: 1>, scalar_prefetch = 0 : i64, scratch_operands = 0 : i64, tpu.core_type = #tpu.core_type<tc>, window_params = [{transform_indices = @transform_0, window_bounds = array<i64: 16, 128>}, {pipeline_mode = #tpu.pipeline_mode<synchronous>, transform_indices = @transform_1, window_bounds = array<i64: 128, 128>}, {pipeline_mode = #tpu.pipeline_mode<synchronous>, transform_indices = @transform_2, window_bounds = array<i64: 1, 128>}, {pipeline_mode = #tpu.pipeline_mode<synchronous>, transform_indices = @transform_3, window_bounds = array<i64: 128, 128>}, {pipeline_mode = #tpu.pipeline_mode<synchronous>, transform_indices = @transform_4, window_bounds = array<i64: 1, 128>}, {transform_indices = @transform_5, window_bounds = array<i64: 16, 128>}]} {
    %c0 = arith.constant 0 : index
    %c0_0 = arith.constant 0 : index
    %0 = vector.load %arg1[%c0, %c0_0] : memref<16x128xf32, #tpu.memory_space<vmem>>, vector<16x128xf32>
    %c0_1 = arith.constant 0 : index
    %c0_2 = arith.constant 0 : index
    %1 = vector.load %arg2[%c0_1, %c0_2] : memref<128x128xf32, #tpu.memory_space<vmem>>, vector<128x128xf32>
    %cst = arith.constant dense<0.000000e+00> : vector<16x128xf32>
    %2 = tpu.matmul %0, %1, %cst {dimension_numbers = #tpu.dot_dimension_numbers<[1], [0], [0], [1], [0, 0, 1, 1], [], []>} : vector<16x128xf32>, vector<128x128xf32>, vector<16x128xf32> -> vector<16x128xf32>
    %c0_3 = arith.constant 0 : index
    %c0_4 = arith.constant 0 : index
    %3 = vector.load %arg3[%c0_3, %c0_4] : memref<1x128xf32, #tpu.memory_space<vmem>>, vector<1x128xf32>
    %4 = vector.broadcast %3 : vector<1x128xf32> to vector<16x128xf32>
    %5 = arith.addf %2, %4 : vector<16x128xf32>
    %cst_5 = arith.constant 0.000000e+00 : f32
    %6 = vector.broadcast %cst_5 : f32 to vector<16x128xf32>
    %7 = arith.maximumf %5, %6 : vector<16x128xf32>
    %c0_6 = arith.constant 0 : index
    %c0_7 = arith.constant 0 : index
    %8 = vector.load %arg4[%c0_6, %c0_7] : memref<128x128xf32, #tpu.memory_space<vmem>>, vector<128x128xf32>
    %cst_8 = arith.constant dense<0.000000e+00> : vector<16x128xf32>
    %9 = tpu.matmul %7, %8, %cst_8 {dimension_numbers = #tpu.dot_dimension_numbers<[1], [0], [0], [1], [0, 0, 1, 1], [], []>} : vector<16x128xf32>, vector<128x128xf32>, vector<16x128xf32> -> vector<16x128xf32>
    %c0_9 = arith.constant 0 : index
    %c0_10 = arith.constant 0 : index
    %10 = vector.load %arg5[%c0_9, %c0_10] : memref<1x128xf32, #tpu.memory_space<vmem>>, vector<1x128xf32>
    %11 = vector.broadcast %10 : vector<1x128xf32> to vector<16x128xf32>
    %12 = arith.addf %9, %11 : vector<16x128xf32>
    %c0_11 = arith.constant 0 : index
    %c0_12 = arith.constant 0 : index
    %13 = vector.load %arg6[%c0_11, %c0_12] : memref<16x128xf32, #tpu.memory_space<vmem>>, vector<16x128xf32>
    tpu.vector_store %arg6[%c0_11, %c0_12], %12 {strides = array<i32>} : memref<16x128xf32, #tpu.memory_space<vmem>>, vector<16x128xf32>,
    return
  }
  func.func @transform_0(%arg0: i32) -> (i32, i32) {
    %c0_i32 = arith.constant 0 : i32
    %c0_i32_0 = arith.constant 0 : i32
    return %arg0, %c0_i32 : i32, i32
  }
  func.func @transform_1(%arg0: i32) -> (i32, i32) {
    %c0_i32 = arith.constant 0 : i32
    %c0_i32_0 = arith.constant 0 : i32
    %c0_i32_1 = arith.constant 0 : i32
    return %c0_i32, %c0_i32_0 : i32, i32
  }
  func.func @transform_2(%arg0: i32) -> (i32, i32) {
    %c0_i32 = arith.constant 0 : i32
    %c0_i32_0 = arith.constant 0 : i32
    %c0_i32_1 = arith.constant 0 : i32
    return %c0_i32, %c0_i32_0 : i32, i32
  }
  func.func @transform_3(%arg0: i32) -> (i32, i32) {
    %c0_i32 = arith.constant 0 : i32
    %c0_i32_0 = arith.constant 0 : i32
    %c0_i32_1 = arith.constant 0 : i32
    return %c0_i32, %c0_i32_0 : i32, i32
  }
  func.func @transform_4(%arg0: i32) -> (i32, i32) {
    %c0_i32 = arith.constant 0 : i32
    %c0_i32_0 = arith.constant 0 : i32
    %c0_i32_1 = arith.constant 0 : i32
    return %c0_i32, %c0_i32_0 : i32, i32
  }
  func.func @transform_5(%arg0: i32) -> (i32, i32) {
    %c0_i32 = arith.constant 0 : i32
    %c0_i32_0 = arith.constant 0 : i32
    return %arg0, %c0_i32 : i32, i32
  }
}

</mosaic_0001>

<bundles_post_ra>
// kernel: tpu_custom_call.1
= control target key start
LH: loop header
LB: loop body
LE: loop exit
PB: predicated region body
PF: predicated region fallthrough
CT: control target
= control target key end

     0   :  { %10 = vsyncpa [#allocation3], 0  ;;  %s663_s0 = inlined_call_operand.hbm [shape: f32[16,128], index: 0, kind: input, shape index: {}]   ;;  %s664_s1 = inlined_call_operand.hbm [shape: f32[128,128], index: 1, kind: input, shape index: {}]   ;;  %s665_s2 = inlined_call_operand.vmem [shape: f32[1,128], index: 2, kind: input, shape index: {}]   ;;  %s666_s3 = inlined_call_operand.hbm [shape: f32[128,128], index: 3, kind: input, shape index: {}]   ;;  %s667_s4 = inlined_call_operand.vmem [shape: f32[1,128], index: 4, kind: input, shape index: {}]   ;;  %s668_s5 = inlined_call_operand.hbm [shape: f32[16,128], index: 5, kind: output, shape index: {}]  }
   0x1   :  { %11 = vsyncpa [#allocation6], 0 }
   0x2   :  { %12 = vsyncpa [#allocation4], 0  ;;  %s554_s18 = smov [#allocation5]   ;;  %s555_s20 = smov [#allocation2]  }
   0x3   :  { %s30_s19 = sshll.u32 %s554_s18, 4  ;;  %s18_s21 = sshll.u32 %s555_s20, 4  ;;  %s31_s19 = int_to_ptr.vmem [resolvable:$true] %s30_s19  ;;  %s590_s21 = int_to_ptr.vmem [resolvable:$true] %s18_s21 }
   0x4   :  { %s460_s24 = scalar_lea.hbm %s664_s1, 2048 }
   0x5   :  { %p461_p0 = scmp.ne.s32.totalorder %s664_s1, %s460_s24  ;;  %p464_p1 = scmp.lt.u32.totalorder %s460_s24, %s664_s1 }
   0x7   :  { %p466_p2 = pnand %p464_p1, %p461_p0 }
   0x9   :  { %469 = shalt.err (!%p466_p2)
}
   0xa   :  { %s470_s29 = scalar_lea.vmem %s31_s19, 2048  ;;  %p475_p4 = scmp.lt.s32.totalorder %s31_s19, %s31_s19 }
   0xb   :  { %p471_p3 = scmp.ne.s32.totalorder %s31_s19, %s470_s29  ;;  %p476_p5 = scmp.lt.s32.totalorder %s470_s29, %s470_s29 }
   0xd   :  { %p477_p6 = por %p476_p5, %p475_p4 }
   0xf   :  { %p478_p7 = pnand %p477_p6, %p471_p3 }
  0x11   :  { %481 = shalt.err (!%p478_p7)
}
  0x12   :  { %s556_s30 = smov 128   ;;  %s557_s6 = smov 8  }
  0x13   :  { %36 = dma.hbm_to_vmem [thread:$0]  %s664_s1, 2048, %s31_s19, [#allocation6], %s556_s30, %s556_s30, %s557_s6  }
  0x14   :  { %s482_s11 = scalar_lea.hbm %s663_s0, 256 }
  0x15   :  { %p483_p8 = scmp.ne.s32.totalorder %s663_s0, %s482_s11  ;;  %p486_p9 = scmp.lt.u32.totalorder %s482_s11, %s663_s0 }
  0x17   :  { %p488_p10 = pnand %p486_p9, %p483_p8 }
  0x19   :  { %491 = shalt.err (!%p488_p10)
}
  0x1a   :  { %s492_s16 = scalar_lea.vmem %s590_s21, 256  ;;  %p497_p12 = scmp.lt.s32.totalorder %s590_s21, %s590_s21 }
  0x1b   :  { %p493_p11 = scmp.ne.s32.totalorder %s590_s21, %s492_s16  ;;  %p498_p13 = scmp.lt.s32.totalorder %s492_s16, %s492_s16 }
  0x1d   :  { %p499_p0 = por %p498_p13, %p497_p12 }
  0x1f   :  { %p500_p1 = pnand %p499_p0, %p493_p11 }
  0x21   :  { %503 = shalt.err (!%p500_p1)
}
  0x22   :  { %24 = dma.hbm_to_vmem [thread:$0]  %s663_s0, 256, %s590_s21, [#allocation3], %s556_s30, %s556_s30, %s557_s6  }
  0x23   :  { %s558_s18 = smov [#allocation7]   ;;  %s504_s23 = scalar_lea.hbm %s666_s3, 2048 }
  0x24   :  { %s44_s19 = sshll.u32 %s558_s18, 4  ;;  %p505_p2 = scmp.ne.s32.totalorder %s666_s3, %s504_s23  ;;  %s45_s19 = int_to_ptr.vmem [resolvable:$true] %s44_s19 }
  0x25   :  { %p508_p3 = scmp.lt.u32.totalorder %s504_s23, %s666_s3 }
  0x27   :  { %p510_p4 = pnand %p508_p3, %p505_p2 }
  0x29   :  { %513 = shalt.err (!%p510_p4)
}
  0x2a   :  { %s514_s28 = scalar_lea.vmem %s45_s19, 2048  ;;  %p519_p6 = scmp.lt.s32.totalorder %s45_s19, %s45_s19 }
  0x2b   :  { %p515_p5 = scmp.ne.s32.totalorder %s45_s19, %s514_s28  ;;  %p520_p7 = scmp.lt.s32.totalorder %s514_s28, %s514_s28 }
  0x2d   :  { %p521_p8 = por %p520_p7, %p519_p6 }
  0x2f   :  { %p522_p9 = pnand %p521_p8, %p515_p5 }
  0x31   :  { %525 = shalt.err (!%p522_p9)
}
  0x32   :  { %50 = dma.hbm_to_vmem [thread:$0]  %s666_s3, 2048, %s45_s19, [#allocation6], %s556_s30, %s556_s30, %s557_s6  }
  0x33   :  { %548 = dma.done.wait [#allocation3], 256  }
  0x34   :  { %549 = vsyncadd [#allocation3], 4294967040 }
  0x35   :  { %550 = dma.done.wait [#allocation6], 4096  }
  0x36   :  { %551 = vsyncadd [#allocation6], 4294963200  ;;  %v64_v0 = vld [vmem:[#allocation5] sm:$0xff]  ;;  %v65_v1 = vld [vmem:[#allocation5 + $0x8] sm:$0xff]  ;;  %s559_s9 = smov [#allocation8]  }
  0x37   :  { %v66_v2 = vld [vmem:[#allocation5 + $0x10] sm:$0xff]  ;;  %v390_v3 = vpack.c.bf16 %v65_v1, %v64_v0  ;;  %v67_v4 = vld [vmem:[#allocation5 + $0x18] sm:$0xff]  ;;  %v68_v6 = vld [vmem:[#allocation5 + $0x20] sm:$0xff]  ;;  %s269_s10 = sshll.u32 %s559_s9, 4  ;;  %s270_s10 = int_to_ptr.vmem [resolvable:$true] %s269_s10 }
  0x38   :  { %v394_v5 = vpack.c.bf16 %v67_v4, %v66_v2  ;;  %v69_v7 = vld [vmem:[#allocation5 + $0x28] sm:$0xff]  ;;  %v70_v9 = vld [vmem:[#allocation5 + $0x30] sm:$0xff]  ;;  %v71_v10 = vld [vmem:[#allocation5 + $0x38] sm:$0xff]  ;;  %p531_p11 = scmp.lt.s32.totalorder %s270_s10, %s270_s10 }
  0x39   :  { %391 = vmatprep.subr.bf16.mxu0 %v390_v3  ;;  %v398_v8 = vpack.c.bf16 %v69_v7, %v68_v6  ;;  %v62_v11 = vld [vmem:[#allocation2] sm:$0xff]  ;;  %v164_v12 = vld [vmem:[#allocation7] sm:$0xff]  ;;  %v165_v13 = vld [vmem:[#allocation7 + $0x8] sm:$0xff]  ;;  %v402_v20 = vpack.c.bf16 %v71_v10, %v70_v9 }
  0x3a   :  { %393 = vmatpush3.bf16.msra.mxu0 %v390_v3  ;;  %352 = vmatprep.mubr.f32.mxu0 %v62_v11  ;;  %v166_v14 = vld [vmem:[#allocation7 + $0x10] sm:$0xff]  ;;  %v422_v15 = vpack.c.bf16 %v165_v13, %v164_v12  ;;  %v167_v16 = vld [vmem:[#allocation7 + $0x18] sm:$0xff]  ;;  %v168_v18 = vld [vmem:[#allocation7 + $0x20] sm:$0xff] }
  0x3b   :  { %395 = vmatprep.subr.bf16.mxu0 %v394_v5  ;;  %v426_v17 = vpack.c.bf16 %v167_v16, %v166_v14  ;;  %v169_v19 = vld [vmem:[#allocation7 + $0x28] sm:$0xff]  ;;  %v72_v21 = vld [vmem:[#allocation5 + $0x40] sm:$0xff]  ;;  %v170_v24 = vld [vmem:[#allocation7 + $0x30] sm:$0xff] }
  0x3c   :  { %423 = vmatprep.subr.bf16.mxu1 %v422_v15  ;;  %v73_v22 = vld [vmem:[#allocation5 + $0x48] sm:$0xff]  ;;  %v430_v23 = vpack.c.bf16 %v169_v19, %v168_v18  ;;  %v171_v25 = vld [vmem:[#allocation7 + $0x38] sm:$0xff]  ;;  %v74_v27 = vld [vmem:[#allocation5 + $0x50] sm:$0xff] }
  0x3d   :  { %425 = vmatpush3.bf16.msra.mxu1 %v422_v15  ;;  %v406_v26 = vpack.c.bf16 %v73_v22, %v72_v21  ;;  %v75_v28 = vld [vmem:[#allocation5 + $0x58] sm:$0xff]  ;;  %v434_v29 = vpack.c.bf16 %v171_v25, %v170_v24  ;;  %v172_v30 = vld [vmem:[#allocation7 + $0x40] sm:$0xff]  ;;  %v173_v31 = vld [vmem:[#allocation7 + $0x48] sm:$0xff] }
  0x3e   :  { %397 = vmatpush3.bf16.msra.mxu0 %v394_v5  ;;  %427 = vmatprep.subr.bf16.mxu1 %v426_v17  ;;  %v410_v32 = vpack.c.bf16 %v75_v28, %v74_v27  ;;  %v76_v33 = vld [vmem:[#allocation5 + $0x60] sm:$0xff]  ;;  %v77_v34 = vld [vmem:[#allocation5 + $0x68] sm:$0xff]  ;;  %v438_v35 = vpack.c.bf16 %v173_v31, %v172_v30  ;;  %v174_v36 = vld [vmem:[#allocation7 + $0x50] sm:$0xff] }
  0x3f   :  { %399 = vmatprep.subr.bf16.mxu0 %v398_v8  ;;  %v175_v37 = vld [vmem:[#allocation7 + $0x58] sm:$0xff]  ;;  %v414_v38 = vpack.c.bf16 %v77_v34, %v76_v33  ;;  %v78_v39 = vld [vmem:[#allocation5 + $0x70] sm:$0xff]  ;;  %v176_v42 = vld [vmem:[#allocation7 + $0x60] sm:$0xff] }
  0x40   :  { %v79_v40 = vld [vmem:[#allocation5 + $0x78] sm:$0xff]  ;;  %v442_v41 = vpack.c.bf16 %v175_v37, %v174_v36  ;;  %v177_v43 = vld [vmem:[#allocation7 + $0x68] sm:$0xff]  ;;  %v178_v47 = vld [vmem:[#allocation7 + $0x70] sm:$0xff] }
  0x41   :  { %429 = vmatpush3.bf16.msra.mxu1 %v426_v17  ;;  %v418_v44 = vpack.c.bf16 %v79_v40, %v78_v39  ;;  %v446_v45 = vpack.c.bf16 %v177_v43, %v176_v42  ;;  %v63_v46 = vld [vmem:[#allocation2 + $0x8] sm:$0xff]  ;;  %v282_v50 = vld [vmem:[%s665_s2] ss:$0 sm:$0xff]  ;;  %s526_s2 = scalar_lea.vmem %s270_s10, 256 }
  0x42   :  { %401 = vmatpush3.bf16.msra.mxu0 %v398_v8  ;;  %431 = vmatprep.subr.bf16.mxu1 %v430_v23  ;;  %v179_v48 = vld [vmem:[#allocation7 + $0x78] sm:$0xff]  ;;  %v283_v57 = vld [vmem:[%s667_s4] ss:$0 sm:$0xff]  ;;  %p527_p10 = scmp.ne.s32.totalorder %s270_s10, %s526_s2  ;;  %p532_p12 = scmp.lt.s32.totalorder %s526_s2, %s526_s2 }
  0x43   :  { %403 = vmatprep.subr.bf16.mxu0 %v402_v20  ;;  %v450_v49 = vpack.c.bf16 %v179_v48, %v178_v47 }
  0x44   :  { %p533_p13 = por %p532_p12, %p531_p11 }
  0x45   :  { %433 = vmatpush3.bf16.msra.mxu1 %v430_v23 }
  0x46   :  { %405 = vmatpush3.bf16.msra.mxu0 %v402_v20  ;;  %435 = vmatprep.subr.bf16.mxu1 %v434_v29  ;;  %p534_p0 = pnand %p533_p13, %p527_p10 }
  0x47   :  { %407 = vmatprep.subr.bf16.mxu0 %v406_v26 }
  0x49   :  { %437 = vmatpush3.bf16.msra.mxu1 %v434_v29 }
  0x4a   :  { %409 = vmatpush3.bf16.msra.mxu0 %v406_v26  ;;  %439 = vmatprep.subr.bf16.mxu1 %v438_v35 }
  0x4b   :  { %411 = vmatprep.subr.bf16.mxu0 %v410_v32 }
  0x4d   :  { %441 = vmatpush3.bf16.msra.mxu1 %v438_v35 }
  0x4e   :  { %413 = vmatpush3.bf16.msra.mxu0 %v410_v32  ;;  %443 = vmatprep.subr.bf16.mxu1 %v442_v41 }
  0x4f   :  { %415 = vmatprep.subr.bf16.mxu0 %v414_v38 }
  0x51   :  { %445 = vmatpush3.bf16.msra.mxu1 %v442_v41 }
  0x52   :  { %417 = vmatpush3.bf16.msra.mxu0 %v414_v38  ;;  %447 = vmatprep.subr.bf16.mxu1 %v446_v45 }
  0x53   :  { %419 = vmatprep.subr.bf16.mxu0 %v418_v44 }
  0x55   :  { %449 = vmatpush3.bf16.msra.mxu1 %v446_v45 }
  0x56   :  { %421 = vmatpush3.bf16.msra.mxu0 %v418_v44  ;;  %451 = vmatprep.subr.bf16.mxu1 %v450_v49 }
  0x59   :  { %353 = vmatmul.mubr.f32.vlgmr.msra.gmra.mrb[0].mxu0 %v63_v46  ;;  %453 = vmatpush3.bf16.msra.mxu1 %v450_v49 }
 0x12c   :  { %v354_v51 = vpop.f32.mrb[0].mxu0 }
 0x12d   :  { %v159_v52 = vadd.f32 %v354_v51, %v282_v50  ;;  %v153_v53 = vpop.f32.mrb[1].mxu0 }
 0x12e   :  { %v154_v54 = vadd.f32 %v282_v50, %v153_v53 }
 0x12f   :  { %v163_v56 = vmax.f32 %v159_v52, 0.0 }
 0x130   :  { %v162_v55 = vmax.f32 %v154_v54, 0.0 }
 0x132   :  { %387 = vmatprep.mubr.f32.mxu1 %v162_v55 }
 0x133   :  { %388 = vmatmul.mubr.f32.vlgmr.msra.gmra.mrb[0].mxu1 %v163_v56 }
 0x206   :  { %v389_v58 = vpop.f32.mrb[0].mxu1 }
 0x207   :  { %v259_v59 = vadd.f32 %v389_v58, %v283_v57  ;;  %v253_v60 = vpop.f32.mrb[1].mxu1 }
 0x208   :  { %v254_v61 = vadd.f32 %v283_v57, %v253_v60 }
 0x209   :  { %263 = vst [vmem:[#allocation8 + $0x8] sm:$0xff] %v259_v59 }
 0x20a   :  { %262 = vst [vmem:[#allocation8] sm:$0xff] %v254_v61 }
 0x20b   :  { %537 = shalt.err (!%p534_p0)
}
 0x20c   :  { %s538_s4 = scalar_lea.hbm %s668_s5, 256 }
 0x20d   :  { %p539_p1 = scmp.ne.s32.totalorder %s668_s5, %s538_s4  ;;  %p542_p2 = scmp.lt.u32.totalorder %s538_s4, %s668_s5 }
 0x20f   :  { %p544_p3 = pnand %p542_p2, %p539_p1 }
 0x211   :  { %547 = shalt.err (!%p544_p3)
}
 0x212   :  { %275 = dma.vmem_to_hbm [thread:$0]  %s270_s10, 256, %s668_s5, [#allocation4], %s556_s30, %s556_s30, %s557_s6  }
 0x213   :  { %552 = dma.done.wait [#allocation4], 256  }
 0x214   :  { %553 = vsyncadd [#allocation4], 4294967040 }
 0x215   :  { %279 = vsyncpa [#allocation3], 1 }
 0x216   :  { %280 = vsyncpa [#allocation6], 1 }
 0x217   :  { %281 = vsyncpa [#allocation4], 1 }

</bundles_post_ra>
